<compile_context>
chip_gen: v5e
topology: v5e:2x2
jax: 0.10.0
libtpu: 0.0.40
codegen_flags: <defaults>
</compile_context>

<pallas_src>
import functools
from math import pi

import jax
import jax.numpy as jnp
from jax import lax
from jax.experimental import pallas as pl
from jax.experimental.pallas import tpu as pltpu

LANE = 128


def _round_up(x, m):
    return ((x + m - 1) // m) * m


def _pick_time_tile(t_pad, tile_t):
    """Largest lane-multiple tile <= tile_t that divides t_pad.

    Prefers >= 2 tiles when t_pad allows it so the 'parallel' grid axis can
    actually feed both v7x TensorCores.
    """
    desired = min(tile_t, t_pad)
    if t_pad >= 2 * LANE:
        desired = min(desired, t_pad // 2)
    desired = max(LANE, (desired // LANE) * LANE)
    tn = desired
    while t_pad % tn:
        tn -= LANE
    return tn


def _vdiffusion_kernel(x_ref,        # VMEM (B*C, tn)
                       noise_ref,    # VMEM (B*C, tn)
                       mask_ref,     # VMEM (1, tn)   1.0 = valid column
                       alpha_ref,    # VMEM (B*C, 1)  cos(sigma*pi/2) per row
                       beta_ref,     # VMEM (B*C, 1)  sin(sigma*pi/2) per row
                       w1_ref,       # VMEM (B*H, B*C) block-diagonal W1
                       bias_ref,     # VMEM (B*H, 1)   b1 + emb*sigma (fused)
                       w2_ref,       # VMEM (B*C, B*H) block-diagonal W2
                       b2_ref,       # VMEM (B*C, 1)
                       sse_ref,      # VMEM (1, 8, 128) per-tile partial SSE
                       *, n_chunks, tc, has_pad):
    alpha = alpha_ref[...]
    beta = beta_ref[...]
    w1 = w1_ref[...]
    bias = bias_ref[...]
    w2 = w2_ref[...]
    b2 = b2_ref[...]
    rows = x_ref.shape[0]

    def tile_sse(use_mask):
        # Chunked walk over the tn-wide slab: keeps h=(B*H, tc) small enough
        # to avoid vreg spills while the DMA'd tile stays large.
        def body(c, acc):
            col = pl.multiple_of(c * tc, tc)
            x = x_ref[:, pl.ds(col, tc)]                       # (B*C, tc)
            noise = noise_ref[:, pl.ds(col, tc)]               # (B*C, tc)

            # --- v-diffusion noising (full-sublane elementwise) ---
            x_noisy = alpha * x + beta * noise
            v_target = alpha * noise - beta * x

            # --- synthetic conditioning net, one batched MXU stream ---
            h = jnp.dot(w1, x_noisy,
                        preferred_element_type=jnp.float32)    # (B*H, tc)
            h = jnp.tanh(h + bias)
            v_pred = jnp.dot(w2, h,
                             preferred_element_type=jnp.float32) + b2

            diff = v_pred - v_target
            dd = diff * diff
            if use_mask:
                dd = dd * mask_ref[:, pl.ds(col, tc)]          # (1, tc) bcast
            return acc + dd

        acc0 = jnp.zeros((rows, tc), dtype=jnp.float32)
        acc = lax.fori_loop(0, n_chunks, body, acc0, unroll=True)
        # Single cross-lane/sublane reduce per tile.
        return jnp.sum(acc)

    def emit(val):
        # Lane-dense unmasked store; wrapper reads [:, 0, 0].
        sse_ref[...] = jnp.full((1, 8, 128), val, dtype=jnp.float32)

    if has_pad:
        is_last = pl.program_id(0) == pl.num_programs(0) - 1

        @pl.when(is_last)
        def _():
            emit(tile_sse(True))       # only the last tile has padded columns

        @pl.when(jnp.logical_not(is_last))
        def _():
            emit(tile_sse(False))      # skip the mask multiply elsewhere
    else:
        emit(tile_sse(False))


def vdiffusion_loss(x, noise, sigmas, params, *, tile_t=4096, chunk_t=512):
    """x, noise: (B, C, T) f32; sigmas: (B,) f32; params: dict of net weights."""
    B, C, T = x.shape
    w1, b1, emb, w2, b2 = (params["w1"], params["b1"], params["emb"],
                           params["w2"], params["b2"])
    H = w1.shape[0]
    BC, BH = B * C, B * H

    # --- time tiling: pad T to a multiple of 128, pick tn | t_pad ---
    t_pad = _round_up(T, LANE)
    tn = _pick_time_tile(t_pad, _round_up(tile_t, LANE))
    grid_t = t_pad // tn
    pad = t_pad - T

    # --- in-kernel chunk width (multiple of 128, divides tn) ---
    tc = max(LANE, (min(chunk_t, tn) // LANE) * LANE)
    while tn % tc:
        tc -= LANE
    n_chunks = tn // tc

    # --- per-row noising coefficients (precomputed; no in-kernel cos/sin) ---
    sigmas = sigmas.astype(jnp.float32)
    angle = sigmas * (pi / 2.0)
    alphas = jnp.cos(angle)                                     # (B,)
    betas = jnp.sin(angle)                                      # (B,)
    alpha_col = jnp.repeat(alphas, C)[:, None]                  # (B*C, 1)
    beta_col = jnp.repeat(betas, C)[:, None]                    # (B*C, 1)

    # --- block-diagonal weights: one MXU stream for the whole batch ---
    eye_b = jnp.eye(B, dtype=jnp.float32)
    w1_bd = jnp.kron(eye_b, w1)                                 # (B*H, B*C)
    w2_bd = jnp.kron(eye_b, w2)                                 # (B*C, B*H)
    bias_bd = (b1[None, :, :]
               + emb[None, :, :] * sigmas[:, None, None]).reshape(BH, 1)
    b2_bd = jnp.tile(b2, (B, 1))                                # (B*C, 1)

    # --- fold batch into the sublane axis ---
    xk = x.reshape(BC, T).astype(jnp.float32)
    nk = noise.reshape(BC, T).astype(jnp.float32)
    if pad:
        xk = jnp.pad(xk, ((0, 0), (0, pad)))
        nk = jnp.pad(nk, ((0, 0), (0, pad)))
    mask = (jnp.arange(t_pad, dtype=jnp.int32) < T).astype(jnp.float32)[None, :]

    kernel = functools.partial(_vdiffusion_kernel,
                               n_chunks=n_chunks, tc=tc, has_pad=bool(pad))

    grid_spec = pltpu.PrefetchScalarGridSpec(
        num_scalar_prefetch=0,
        grid=(grid_t,),
        in_specs=[
            pl.BlockSpec((BC, tn), lambda g: (0, g)),           # x
            pl.BlockSpec((BC, tn), lambda g: (0, g)),           # noise
            pl.BlockSpec((1, tn), lambda g: (0, g)),            # mask
            pl.BlockSpec((BC, 1), lambda g: (0, 0)),            # alpha col
            pl.BlockSpec((BC, 1), lambda g: (0, 0)),            # beta col
            pl.BlockSpec((BH, BC), lambda g: (0, 0)),           # W1 block-diag
            pl.BlockSpec((BH, 1), lambda g: (0, 0)),            # fused bias
            pl.BlockSpec((BC, BH), lambda g: (0, 0)),           # W2 block-diag
            pl.BlockSpec((BC, 1), lambda g: (0, 0)),            # b2
        ],
        # Independent per-tile partial SSE blocks -> no resident accumulator,
        # so the grid axis stays "parallel" (v7x megacore splits the tiles).
        out_specs=pl.BlockSpec((1, 8, 128), lambda g: (g, 0, 0)),
    )

    partial_sse = pl.pallas_call(
        kernel,
        out_shape=jax.ShapeDtypeStruct((grid_t, 8, 128), jnp.float32),
        grid_spec=grid_spec,
        compiler_params=pltpu.CompilerParams(
            dimension_semantics=("parallel",)),
    )(xk, nk, mask, alpha_col, beta_col, w1_bd, bias_bd, w2_bd, b2_bd)

    return jnp.sum(partial_sse[:, 0, 0]) / jnp.float32(B * C * T)


def vdiffusion_loss_ref(x, noise, sigmas, params):
    """Pure-JAX reference of the same forward pass (for sanity checking)."""
    angle = sigmas * (pi / 2.0)
    alphas = jnp.cos(angle)[:, None, None]
    betas = jnp.sin(angle)[:, None, None]
    x_noisy = alphas * x + betas * noise
    v_target = alphas * noise - betas * x
    cond = params["emb"][None, :, :] * sigmas[:, None, None]        # (B,H,1)
    h = jnp.einsum("hc,bct->bht", params["w1"], x_noisy)
    h = jnp.tanh(h + params["b1"][None] + cond)
    v_pred = jnp.einsum("ch,bht->bct", params["w2"], h) + params["b2"][None]
    return jnp.mean((v_pred - v_target) ** 2)


if __name__ == "__main__":
    B, C, T, H = 2, 4, 16, 32

    key = jax.random.PRNGKey(0)
    kx, kn, ks, k1, k2, k3, k4, k5 = jax.random.split(key, 8)

    x = jax.random.normal(kx, (B, C, T), dtype=jnp.float32)
    # torch.randn_like(x)
    noise = jax.random.normal(kn, (B, C, T), dtype=jnp.float32)
    # UniformDistribution(0, 1): sigmas ~ U[0, 1), one per batch element
    sigmas = jax.random.uniform(ks, (B,), dtype=jnp.float32)

    # Deterministic synthetic net parameters (the module's `net` is arbitrary).
    params = {
        "w1": jax.random.normal(k1, (H, C), dtype=jnp.float32) * (1.0 / (C ** 0.5)),
        "b1": jax.random.normal(k2, (H, 1), dtype=jnp.float32) * 0.1,
        "emb": jax.random.normal(k3, (H, 1), dtype=jnp.float32) * 0.1,
        "w2": jax.random.normal(k4, (C, H), dtype=jnp.float32) * (1.0 / (H ** 0.5)),
        "b2": jax.random.normal(k5, (C, 1), dtype=jnp.float32) * 0.1,
    }

    loss = vdiffusion_loss(x, noise, sigmas, params)
    loss = jax.block_until_ready(loss)

    loss_ref = vdiffusion_loss_ref(x, noise, sigmas, params)
    assert jnp.allclose(loss, loss_ref, rtol=1e-3, atol=1e-5), (loss, loss_ref)

    print("KERNEL_OK")
</pallas_src>

<mosaic_0001>
module attributes {stable_mosaic.version = 11 : i64} {
  func.func @_vdiffusion_kernel(%arg0: i32, %arg1: memref<8x128xf32, #tpu.memory_space<vmem>>, %arg2: memref<8x128xf32, #tpu.memory_space<vmem>>, %arg3: memref<1x128xf32, #tpu.memory_space<vmem>>, %arg4: memref<8x1xf32, #tpu.memory_space<vmem>>, %arg5: memref<8x1xf32, #tpu.memory_space<vmem>>, %arg6: memref<64x8xf32, #tpu.memory_space<vmem>>, %arg7: memref<64x1xf32, #tpu.memory_space<vmem>>, %arg8: memref<8x64xf32, #tpu.memory_space<vmem>>, %arg9: memref<8x1xf32, #tpu.memory_space<vmem>>, %arg10: memref<1x8x128xf32, #tpu.memory_space<vmem>>) attributes {dimension_semantics = [#tpu.dimension_semantics<parallel>], iteration_bounds = array<i64: 1>, scalar_prefetch = 0 : i64, scratch_operands = 0 : i64, tpu.core_type = #tpu.core_type<tc>, window_params = [{transform_indices = @transform_0, window_bounds = array<i64: 8, 128>}, {transform_indices = @transform_1, window_bounds = array<i64: 8, 128>}, {transform_indices = @transform_2, window_bounds = array<i64: 1, 128>}, {pipeline_mode = #tpu.pipeline_mode<synchronous>, transform_indices = @transform_3, window_bounds = array<i64: 8, 1>}, {pipeline_mode = #tpu.pipeline_mode<synchronous>, transform_indices = @transform_4, window_bounds = array<i64: 8, 1>}, {pipeline_mode = #tpu.pipeline_mode<synchronous>, transform_indices = @transform_5, window_bounds = array<i64: 64, 8>}, {pipeline_mode = #tpu.pipeline_mode<synchronous>, transform_indices = @transform_6, window_bounds = array<i64: 64, 1>}, {pipeline_mode = #tpu.pipeline_mode<synchronous>, transform_indices = @transform_7, window_bounds = array<i64: 8, 64>}, {pipeline_mode = #tpu.pipeline_mode<synchronous>, transform_indices = @transform_8, window_bounds = array<i64: 8, 1>}, {transform_indices = @transform_9, window_bounds = array<i64: 1, 8, 128>}]} {
    %c0 = arith.constant 0 : index
    %c0_0 = arith.constant 0 : index
    %0 = vector.load %arg4[%c0, %c0_0] : memref<8x1xf32, #tpu.memory_space<vmem>>, vector<8x1xf32>
    %c0_1 = arith.constant 0 : index
    %c0_2 = arith.constant 0 : index
    %1 = vector.load %arg5[%c0_1, %c0_2] : memref<8x1xf32, #tpu.memory_space<vmem>>, vector<8x1xf32>
    %c0_3 = arith.constant 0 : index
    %c0_4 = arith.constant 0 : index
    %2 = vector.load %arg6[%c0_3, %c0_4] : memref<64x8xf32, #tpu.memory_space<vmem>>, vector<64x8xf32>
    %c0_5 = arith.constant 0 : index
    %c0_6 = arith.constant 0 : index
    %3 = vector.load %arg7[%c0_5, %c0_6] : memref<64x1xf32, #tpu.memory_space<vmem>>, vector<64x1xf32>
    %c0_7 = arith.constant 0 : index
    %c0_8 = arith.constant 0 : index
    %4 = vector.load %arg8[%c0_7, %c0_8] : memref<8x64xf32, #tpu.memory_space<vmem>>, vector<8x64xf32>
    %c0_9 = arith.constant 0 : index
    %c0_10 = arith.constant 0 : index
    %5 = vector.load %arg9[%c0_9, %c0_10] : memref<8x1xf32, #tpu.memory_space<vmem>>, vector<8x1xf32>
    %c0_i32 = arith.constant 0 : i32
    %6 = arith.cmpi eq, %arg0, %c0_i32 : i32
    %7 = arith.extui %6 : i1 to i32
    %c0_i32_11 = arith.constant 0 : i32
    %8 = arith.cmpi ne, %7, %c0_i32_11 : i32
    scf.if %8 {
      %cst = arith.constant 0.000000e+00 : f32
      %12 = vector.broadcast %cst : f32 to vector<8x128xf32>
      %c0_i32_13 = arith.constant 0 : i32
      %c128_i32 = arith.constant 128 : i32
      %13 = arith.muli %c0_i32_13, %c128_i32 : i32
      %14 = tpu.assume_multiple %13, 128 : i32
      %c0_14 = arith.constant 0 : index
      %15 = arith.index_cast %14 : i32 to index
      %16 = vector.load %arg1[%c0_14, %15] : memref<8x128xf32, #tpu.memory_space<vmem>>, vector<8x128xf32>
      %c0_15 = arith.constant 0 : index
      %17 = arith.index_cast %14 : i32 to index
      %18 = vector.load %arg2[%c0_15, %17] : memref<8x128xf32, #tpu.memory_space<vmem>>, vector<8x128xf32>
      %19 = vector.broadcast %0 : vector<8x1xf32> to vector<8x128xf32>
      %20 = arith.mulf %19, %16 : vector<8x128xf32>
      %21 = vector.broadcast %1 : vector<8x1xf32> to vector<8x128xf32>
      %22 = arith.mulf %21, %18 : vector<8x128xf32>
      %23 = arith.addf %20, %22 : vector<8x128xf32>
      %24 = vector.broadcast %0 : vector<8x1xf32> to vector<8x128xf32>
      %25 = arith.mulf %24, %18 : vector<8x128xf32>
      %26 = vector.broadcast %1 : vector<8x1xf32> to vector<8x128xf32>
      %27 = arith.mulf %26, %16 : vector<8x128xf32>
      %28 = arith.subf %25, %27 : vector<8x128xf32>
      %cst_16 = arith.constant dense<0.000000e+00> : vector<64x128xf32>
      %29 = tpu.matmul %2, %23, %cst_16 {dimension_numbers = #tpu.dot_dimension_numbers<[1], [0], [0], [1], [0, 0, 1, 1], [], []>} : vector<64x8xf32>, vector<8x128xf32>, vector<64x128xf32> -> vector<64x128xf32>
      %30 = vector.broadcast %3 : vector<64x1xf32> to vector<64x128xf32>
      %31 = arith.addf %29, %30 : vector<64x128xf32>
      %32 = math.tanh %31 : vector<64x128xf32>
      %cst_17 = arith.constant dense<0.000000e+00> : vector<8x128xf32>
      %33 = tpu.matmul %4, %32, %cst_17 {dimension_numbers = #tpu.dot_dimension_numbers<[1], [0], [0], [1], [0, 0, 1, 1], [], []>} : vector<8x64xf32>, vector<64x128xf32>, vector<8x128xf32> -> vector<8x128xf32>
      %34 = vector.broadcast %5 : vector<8x1xf32> to vector<8x128xf32>
      %35 = arith.addf %33, %34 : vector<8x128xf32>
      %36 = arith.subf %35, %28 : vector<8x128xf32>
      %37 = arith.mulf %36, %36 : vector<8x128xf32>
      %c0_18 = arith.constant 0 : index
      %38 = arith.index_cast %14 : i32 to index
      %39 = vector.load %arg3[%c0_18, %38] : memref<1x128xf32, #tpu.memory_space<vmem>>, vector<1x128xf32>
      %40 = vector.broadcast %39 : vector<1x128xf32> to vector<8x128xf32>
      %41 = arith.mulf %37, %40 : vector<8x128xf32>
      %42 = arith.addf %12, %41 : vector<8x128xf32>
      %c1_i32 = arith.constant 1 : i32
      %43 = vector.shape_cast %42 : vector<8x128xf32> to vector<1x8x128xf32>
      %cst_19 = arith.constant dense<0.000000e+00> : vector<1xf32>
      %44 = vector.multi_reduction <add>, %43, %cst_19 [1, 2] : vector<1x8x128xf32> to vector<1xf32>
      %45 = vector.shape_cast %44 : vector<1xf32> to vector<1x1x1xf32>
      %46 = vector.extract %45[0, 0, 0] : f32 from vector<1x1x1xf32>
      %47 = vector.broadcast %46 : f32 to vector<1x8x128xf32>
      %c0_20 = arith.constant 0 : index
      %c0_21 = arith.constant 0 : index
      %c0_22 = arith.constant 0 : index
      %48 = vector.load %arg10[%c0_20, %c0_21, %c0_22] : memref<1x8x128xf32, #tpu.memory_space<vmem>>, vector<1x8x128xf32>
      tpu.vector_store %arg10[%c0_20, %c0_21, %c0_22], %47 {strides = array<i32>} : memref<1x8x128xf32, #tpu.memory_space<vmem>>, vector<1x8x128xf32>,
    } else {
    }
    %true = arith.constant true
    %9 = arith.xori %6, %true : i1
    %10 = arith.extui %9 : i1 to i32
    %c0_i32_12 = arith.constant 0 : i32
    %11 = arith.cmpi ne, %10, %c0_i32_12 : i32
    scf.if %11 {
      %cst = arith.constant 0.000000e+00 : f32
      %12 = vector.broadcast %cst : f32 to vector<8x128xf32>
      %c0_i32_13 = arith.constant 0 : i32
      %c128_i32 = arith.constant 128 : i32
      %13 = arith.muli %c0_i32_13, %c128_i32 : i32
      %14 = tpu.assume_multiple %13, 128 : i32
      %c0_14 = arith.constant 0 : index
      %15 = arith.index_cast %14 : i32 to index
      %16 = vector.load %arg1[%c0_14, %15] : memref<8x128xf32, #tpu.memory_space<vmem>>, vector<8x128xf32>
      %c0_15 = arith.constant 0 : index
      %17 = arith.index_cast %14 : i32 to index
      %18 = vector.load %arg2[%c0_15, %17] : memref<8x128xf32, #tpu.memory_space<vmem>>, vector<8x128xf32>
      %19 = vector.broadcast %0 : vector<8x1xf32> to vector<8x128xf32>
      %20 = arith.mulf %19, %16 : vector<8x128xf32>
      %21 = vector.broadcast %1 : vector<8x1xf32> to vector<8x128xf32>
      %22 = arith.mulf %21, %18 : vector<8x128xf32>
      %23 = arith.addf %20, %22 : vector<8x128xf32>
      %24 = vector.broadcast %0 : vector<8x1xf32> to vector<8x128xf32>
      %25 = arith.mulf %24, %18 : vector<8x128xf32>
      %26 = vector.broadcast %1 : vector<8x1xf32> to vector<8x128xf32>
      %27 = arith.mulf %26, %16 : vector<8x128xf32>
      %28 = arith.subf %25, %27 : vector<8x128xf32>
      %cst_16 = arith.constant dense<0.000000e+00> : vector<64x128xf32>
      %29 = tpu.matmul %2, %23, %cst_16 {dimension_numbers = #tpu.dot_dimension_numbers<[1], [0], [0], [1], [0, 0, 1, 1], [], []>} : vector<64x8xf32>, vector<8x128xf32>, vector<64x128xf32> -> vector<64x128xf32>
      %30 = vector.broadcast %3 : vector<64x1xf32> to vector<64x128xf32>
      %31 = arith.addf %29, %30 : vector<64x128xf32>
      %32 = math.tanh %31 : vector<64x128xf32>
      %cst_17 = arith.constant dense<0.000000e+00> : vector<8x128xf32>
      %33 = tpu.matmul %4, %32, %cst_17 {dimension_numbers = #tpu.dot_dimension_numbers<[1], [0], [0], [1], [0, 0, 1, 1], [], []>} : vector<8x64xf32>, vector<64x128xf32>, vector<8x128xf32> -> vector<8x128xf32>
      %34 = vector.broadcast %5 : vector<8x1xf32> to vector<8x128xf32>
      %35 = arith.addf %33, %34 : vector<8x128xf32>
      %36 = arith.subf %35, %28 : vector<8x128xf32>
      %37 = arith.mulf %36, %36 : vector<8x128xf32>
      %38 = arith.addf %12, %37 : vector<8x128xf32>
      %c1_i32 = arith.constant 1 : i32
      %39 = vector.shape_cast %38 : vector<8x128xf32> to vector<1x8x128xf32>
      %cst_18 = arith.constant dense<0.000000e+00> : vector<1xf32>
      %40 = vector.multi_reduction <add>, %39, %cst_18 [1, 2] : vector<1x8x128xf32> to vector<1xf32>
      %41 = vector.shape_cast %40 : vector<1xf32> to vector<1x1x1xf32>
      %42 = vector.extract %41[0, 0, 0] : f32 from vector<1x1x1xf32>
      %43 = vector.broadcast %42 : f32 to vector<1x8x128xf32>
      %c0_19 = arith.constant 0 : index
      %c0_20 = arith.constant 0 : index
      %c0_21 = arith.constant 0 : index
      %44 = vector.load %arg10[%c0_19, %c0_20, %c0_21] : memref<1x8x128xf32, #tpu.memory_space<vmem>>, vector<1x8x128xf32>
      tpu.vector_store %arg10[%c0_19, %c0_20, %c0_21], %43 {strides = array<i32>} : memref<1x8x128xf32, #tpu.memory_space<vmem>>, vector<1x8x128xf32>,
    } else {
    }
    return
  }
  func.func @transform_0(%arg0: i32) -> (i32, i32) {
    %c0_i32 = arith.constant 0 : i32
    %c0_i32_0 = arith.constant 0 : i32
    return %c0_i32, %arg0 : i32, i32
  }
  func.func @transform_1(%arg0: i32) -> (i32, i32) {
    %c0_i32 = arith.constant 0 : i32
    %c0_i32_0 = arith.constant 0 : i32
    return %c0_i32, %arg0 : i32, i32
  }
  func.func @transform_2(%arg0: i32) -> (i32, i32) {
    %c0_i32 = arith.constant 0 : i32
    %c0_i32_0 = arith.constant 0 : i32
    return %c0_i32, %arg0 : i32, i32
  }
  func.func @transform_3(%arg0: i32) -> (i32, i32) {
    %c0_i32 = arith.constant 0 : i32
    %c0_i32_0 = arith.constant 0 : i32
    %c0_i32_1 = arith.constant 0 : i32
    return %c0_i32, %c0_i32_0 : i32, i32
  }
  func.func @transform_4(%arg0: i32) -> (i32, i32) {
    %c0_i32 = arith.constant 0 : i32
    %c0_i32_0 = arith.constant 0 : i32
    %c0_i32_1 = arith.constant 0 : i32
    return %c0_i32, %c0_i32_0 : i32, i32
  }
  func.func @transform_5(%arg0: i32) -> (i32, i32) {
    %c0_i32 = arith.constant 0 : i32
    %c0_i32_0 = arith.constant 0 : i32
    %c0_i32_1 = arith.constant 0 : i32
    return %c0_i32, %c0_i32_0 : i32, i32
  }
  func.func @transform_6(%arg0: i32) -> (i32, i32) {
    %c0_i32 = arith.constant 0 : i32
    %c0_i32_0 = arith.constant 0 : i32
    %c0_i32_1 = arith.constant 0 : i32
    return %c0_i32, %c0_i32_0 : i32, i32
  }
  func.func @transform_7(%arg0: i32) -> (i32, i32) {
    %c0_i32 = arith.constant 0 : i32
    %c0_i32_0 = arith.constant 0 : i32
    %c0_i32_1 = arith.constant 0 : i32
    return %c0_i32, %c0_i32_0 : i32, i32
  }
  func.func @transform_8(%arg0: i32) -> (i32, i32) {
    %c0_i32 = arith.constant 0 : i32
    %c0_i32_0 = arith.constant 0 : i32
    %c0_i32_1 = arith.constant 0 : i32
    return %c0_i32, %c0_i32_0 : i32, i32
  }
  func.func @transform_9(%arg0: i32) -> (i32, i32, i32) {
    %c0_i32 = arith.constant 0 : i32
    %c0_i32_0 = arith.constant 0 : i32
    %c0_i32_1 = arith.constant 0 : i32
    return %arg0, %c0_i32, %c0_i32_0 : i32, i32, i32
  }
}

</mosaic_0001>

<bundles_post_ra>
// kernel: tpu_custom_call.1
= control target key start
LH: loop header
LB: loop body
LE: loop exit
PB: predicated region body
PF: predicated region fallthrough
CT: control target
= control target key end

     0   :  { %v502_v1 = vmov 0   ;;  %s643_s0 = inlined_call_operand.vmem [shape: f32[8,128], index: 0, kind: input, shape index: {}]   ;;  %s644_s1 = inlined_call_operand.vmem [shape: f32[8,128], index: 1, kind: input, shape index: {}]   ;;  %s645_s2 = inlined_call_operand.vmem [shape: f32[1,128], index: 2, kind: input, shape index: {}]   ;;  %s646_s3 = inlined_call_operand.vmem [shape: f32[8,1], index: 3, kind: input, shape index: {}]   ;;  %s647_s4 = inlined_call_operand.vmem [shape: f32[8,1], index: 4, kind: input, shape index: {}]   ;;  %s648_s5 = inlined_call_operand.vmem [shape: f32[64,8], index: 5, kind: input, shape index: {}]   ;;  %s649_s6 = inlined_call_operand.vmem [shape: f32[64,1], index: 6, kind: input, shape index: {}]   ;;  %s650_s7 = inlined_call_operand.vmem [shape: f32[8,64], index: 7, kind: input, shape index: {}]   ;;  %s651_s8 = inlined_call_operand.vmem [shape: f32[8,1], index: 8, kind: input, shape index: {}]   ;;  %s652_s9 = inlined_call_operand.hbm [shape: f32[1,8,128], index: 9, kind: output, shape index: {}]  }
   0x1   :  { %v33_v0 = vld [vmem:[%s646_s3] sm:$0xff]  ;;  %456 = vset.pattern.permute.xlu0 %v502_v1  ;;  %457 = vset.pattern.permute.xlu1 %v502_v1 }
   0x2   :  { %61 = vperm.xlu0 %456, %v33_v0   ;;  %458 = vset.pattern.permute.xlu2 %v502_v1 }
   0x3   :  { %14 = vsyncpa [#allocation3], 0  ;;  %v34_v2 = vld [vmem:[%s647_s4] sm:$0xff]  ;;  %v46_v3 = vld [vmem:[%s649_s6 + $0x18] sm:$0xff]  ;;  %vm115_vm0 = vcmask 64512   ;;  %vm194_vm1 = vcmask 523264  }
   0x4   :  { %v43_v4 = vld [vmem:[%s649_s6] sm:$0xff]  ;;  %v50_v5 = vld [vmem:[%s649_s6 + $0x38] sm:$0xff]  ;;  %v49_v6 = vld [vmem:[%s649_s6 + $0x30] sm:$0xff]  ;;  %s423_s28 = sshll.u32 %s652_s9, 4  ;;  %s424_s28 = int_to_ptr.hbm [resolvable:$true] %s423_s28 }
   0x5   :  { %112 = vperm.xlu1 %457, %v50_v5   ;;  %v45_v7 = vld [vmem:[%s649_s6 + $0x10] sm:$0xff]  ;;  %v58_v8 = vld [vmem:[%s644_s1] sm:$0xff]  ;;  %v48_v9 = vld [vmem:[%s649_s6 + $0x28] sm:$0xff] }
   0x6   :  { %102 = vperm.xlu2 %458, %v48_v9   ;;  %v52_v12 = vld [vmem:[%s651_s8] sm:$0xff]  ;;  %v38_v22 = vld [vmem:[%s648_s5 + $0x18] sm:$0xff]  ;;  %v41_v23 = vld [vmem:[%s648_s5 + $0x30] sm:$0xff] }
   0x7   :  { %v47_v13 = vld [vmem:[%s649_s6 + $0x20] sm:$0xff]  ;;  %v44_v24 = vld [vmem:[%s649_s6 + $0x8] sm:$0xff]  ;;  %v42_v27 = vld [vmem:[%s648_s5 + $0x38] sm:$0xff] }
   0x8   :  { %v57_v14 = vld [vmem:[%s643_s0] sm:$0xff]  ;;  %v36_v25 = vld [vmem:[%s648_s5 + $0x8] sm:$0xff]  ;;  %v37_v28 = vld [vmem:[%s648_s5 + $0x10] sm:$0xff] }
   0x9   :  { %v35_v21 = vld [vmem:[%s648_s5] sm:$0xff]  ;;  %v40_v29 = vld [vmem:[%s648_s5 + $0x28] sm:$0xff] }
   0xa   :  { %67 = vperm.xlu0 %456, %v34_v2   ;;  %v39_v26 = vld [vmem:[%s648_s5 + $0x20] sm:$0xff] }
   0xb   :  { %v51_v61 = vld [vmem:[%s650_s7] sm:$0xff]  ;;  %s503_s7 = smov [#allocation2]  }
   0xc   :  { %s421_s25 = sshll.u32 %s503_s7, 4  ;;  %s422_s25 = int_to_ptr.vmem [resolvable:$true] %s421_s25 }
   0xd   :  { %107 = vperm.xlu1 %457, %v49_v6  }
   0xe   :  { %97 = vperm.xlu2 %458, %v47_v13  }
  0x12   :  { %92 = vperm.xlu0 %456, %v46_v3   ;;  %v459_v3 = vld [vmem:[%s645_s2] ss:$0 sm:$0xff] }
  0x15   :  { %87 = vperm.xlu1 %457, %v45_v7  }
  0x16   :  { %82 = vperm.xlu2 %458, %v44_v24  }
  0x1a   :  { %77 = vperm.xlu0 %456, %v43_v4  }
  0x1d   :  { %191 = vperm.xlu1 %457, %v52_v12  }
  0x60   :  { %v103_v32 = vpop.permute.xlu2 %102 }
  0x68   :  { %v98_v40 = vpop.permute.xlu2 %97 }
  0x70   :  { %v83_v51 = vpop.permute.xlu2 %82 }
  0x74   :  { %v62_v10 = vpop.permute.xlu0 %61 }
  0x75   :  { %v581_v11 = vmul.f32 %v62_v10, %v58_v8  ;;  %v64_v16 = vmul.f32 %v62_v10, %v57_v14 }
  0x77   :  { %v113_v31 = vpop.permute.xlu1 %112 }
  0x7c   :  { %v68_v15 = vpop.permute.xlu0 %67 }
  0x7d   :  { %v70_v17 = vmul.f32 %v68_v15, %v58_v8  ;;  %v592_v18 = vmul.f32 %v68_v15, %v57_v14 }
  0x7f   :  { %v71_v19 = vadd.f32 %v70_v17, %v64_v16  ;;  %v74_v20 = vsub.f32 %v581_v11, %v592_v18  ;;  %v108_v38 = vpop.permute.xlu1 %107 }
  0x81   :  { %155 = vmatpush.msra.mxu0 %v71_v19  ;;  %450 = vmatpush.msra.mxu2 %v71_v19 }
  0x82   :  { %451 = vmatpush.msra.mxu3 %v71_v19  ;;  %432 = vmatmul.msk.f32.vlgmr.msra.gmra.mxu0 %vm115_vm0, %v35_v21 }
  0x83   :  { %435 = vmatmul.msk.f32.vlgmr.msra.gmra.mxu2 %vm115_vm0, %v38_v22  ;;  %438 = vmatmul.msk.f32.vlgmr.msra.gmra.mxu3 %vm115_vm0, %v41_v23 }
  0x84   :  { %v93_v42 = vpop.permute.xlu0 %92 }
  0x87   :  { %v88_v50 = vpop.permute.xlu1 %87 }
  0x8a   :  { %433 = vmatmul.msk.f32.gmra.mxu0 %vm115_vm0, %v36_v25 }
  0x8b   :  { %436 = vmatmul.msk.f32.gmra.mxu2 %vm115_vm0, %v39_v26  ;;  %439 = vmatmul.msk.f32.gmra.mxu3 %vm115_vm0, %v42_v27 }
  0x8c   :  { %v78_v54 = vpop.permute.xlu0 %77 }
  0x8f   :  { %v192_v63 = vpop.permute.xlu1 %191 }
  0x92   :  { %434 = vmatmul.msk.f32.gmra.mxu0 %vm115_vm0, %v37_v28 }
  0x93   :  { %437 = vmatmul.msk.f32.gmra.mxu2 %vm115_vm0, %v40_v29 }
  0xff   :  { %v157_v30 = vpop.f32.mrf.mxu0 }
 0x100   :  { %v158_v56 = vadd.f32 %v157_v30, %v78_v54 }
 0x106   :  { %v166_v33 = vpop.f32.mrf.mxu2  ;;  %v175_v34 = vpop.f32.mrf.mxu3 }
 0x107   :  { %v160_v35 = vpop.f32.mrf.mxu0  ;;  %v176_v41 = vadd.f32 %v175_v34, %v108_v38  ;;  %v167_v48 = vadd.f32 %v166_v33, %v93_v42 }
 0x108   :  { %v161_v53 = vadd.f32 %v160_v35, %v83_v51 }
 0x10e   :  { %v169_v36 = vpop.f32.mrf.mxu2  ;;  %v178_v37 = vpop.f32.mrf.mxu3 }
 0x10f   :  { %v179_v39 = vadd.f32 %v178_v37, %v113_v31  ;;  %v170_v44 = vadd.f32 %v169_v36, %v98_v40  ;;  %v163_v47 = vpop.f32.mrf.mxu0 }
 0x110   :  { %v164_v52 = vadd.f32 %v163_v47, %v88_v50 }
 0x111   :  { %460 = vtanh.f32 %v179_v39 }
 0x112   :  { %462 = vtanh.f32 %v176_v41 }
 0x116   :  { %v172_v43 = vpop.f32.mrf.mxu2 }
 0x117   :  { %v173_v45 = vadd.f32 %v172_v43, %v103_v32  ;;  %v461_v46 = vpop.eup %460 }
 0x118   :  { %206 = vmatpush.msra.mxu1 %v461_v46  ;;  %v463_v49 = vpop.eup %462 }
 0x119   :  { %464 = vtanh.f32 %v173_v45 }
 0x11a   :  { %466 = vtanh.f32 %v170_v44  ;;  %207 = vmatpush.msra.mxu1 %v463_v49 }
 0x11b   :  { %468 = vtanh.f32 %v167_v48 }
 0x11c   :  { %470 = vtanh.f32 %v164_v52 }
 0x11d   :  { %472 = vtanh.f32 %v161_v53 }
 0x11e   :  { %474 = vtanh.f32 %v158_v56 }
 0x11f   :  { %v465_v55 = vpop.eup %464 }
 0x120   :  { %208 = vmatpush.msra.mxu1 %v465_v55  ;;  %v467_v57 = vpop.eup %466 }
 0x121   :  { %v469_v58 = vpop.eup %468 }
 0x122   :  { %209 = vmatpush.msra.mxu1 %v467_v57  ;;  %v471_v59 = vpop.eup %470 }
 0x123   :  { %v473_v60 = vpop.eup %472 }
 0x124   :  { %210 = vmatpush.msra.mxu1 %v469_v58  ;;  %v475_v62 = vpop.eup %474 }
 0x126   :  { %211 = vmatpush.msra.mxu1 %v471_v59 }
 0x128   :  { %212 = vmatpush.msra.mxu1 %v473_v60 }
 0x12a   :  { %213 = vmatpush.msra.mxu1 %v475_v62 }
 0x12b   :  { %440 = vmatmul.msk.f32.vlgmr.msra.gmra.mxu1 %vm194_vm1, %v51_v61 }
 0x1a8   :  { %v215_v0 = vpop.f32.mrf.mxu1 }
 0x1a9   :  { %v216_v1 = vadd.f32 %v215_v0, %v192_v63 }
 0x1ab   :  { %v218_v2 = vsub.f32 %v216_v1, %v74_v20 }
 0x1ad   :  { %v219_v4 = vmul.f32 %v218_v2, %v218_v2 }
 0x1af   :  { %v224_v5 = vmul.f32 %v459_v3, %v219_v4 }
 0x1b1   :  { %226 = vadd.xlane.f32.xlu2 %v224_v5 }
 0x224   :  { %v227_v6 = vpop.xlane.xlu2 %226 }
 0x225   :  { %v228_v7 = vrot.slane %v227_v6, 4 }
 0x227   :  { %v229_v8 = vadd.f32 %v228_v7, %v227_v6 }
 0x229   :  { %v230_v9 = vrot.slane %v229_v8, 2 }
 0x22b   :  { %v231_v10 = vadd.f32 %v230_v9, %v229_v8 }
 0x22d   :  { %v232_v12 = vrot.slane %v231_v10, 1 }
 0x22f   :  { %v233_v13 = vadd.f32 %v232_v12, %v231_v10 }
 0x231   :  { %452 = vpush %v233_v13 }
 0x262   :  { %s453_s29 = spop %452 }
 0x263   :  { %v235_v11 = vstv %s453_s29 }
 0x264   :  { %236 = vst [vmem:[#allocation2] sm:$0xff] %v235_v11 }
 0x265   :  { %426 = dma.vmem_to_hbm [thread:$0]  %s422_s25, 128, %s424_s28, [#allocation3]  }
 0x266   :  { %500 = dma.done.wait [#allocation3], 128  }
 0x267   :  { %501 = vsyncadd [#allocation3], 4294967168 }
 0x268   :  { %431 = vsyncpa [#allocation3], 1 }

</bundles_post_ra>
